<compile_context>
chip_gen: v7x
topology: tpu7x:2x2x1
jax: 0.10.0
libtpu: 0.0.40
codegen_flags: <defaults>
</compile_context>

<pallas_src>
import functools

import jax
import jax.numpy as jnp
from jax import lax
from jax.experimental import pallas as pl
from jax.experimental.pallas import tpu as pltpu


# ---------------------------------------------------------------------------
# Kernel: projection (+bias, both pre-scaled by 1/k) -> ReLU -> 0/1-pool matmul.
# ---------------------------------------------------------------------------
def _frame_avg_pool_kernel(x_ref, w_ref, b_ref, o_ref, *,
                           bb, t, t_out, kernel_size, stride):
    # x_ref: (bb, C_in, T)   w_ref: (H, C_in)  b_ref: (H, 1)  o_ref: (bb, H, T_out)
    w = w_ref[...]
    bias = b_ref[...]

    # Last input column that any pooling window touches (AvgPool1d drops the tail).
    valid = (t_out - 1) * stride + kernel_size

    # 0/1 pooling matrix built from iota (no HBM operand, exact sum; the 1/k
    # average is already folded into w and bias).  (valid, t_out), f32.
    rows = lax.broadcasted_iota(jnp.int32, (valid, t_out), 0)
    cols = lax.broadcasted_iota(jnp.int32, (valid, t_out), 1)
    start = cols * stride
    pool = ((rows >= start) & (rows < start + kernel_size)).astype(jnp.float32)

    # Static unrolled loop over the (small) batch tile; C_in is tiny so the MXU
    # is idle either way -- the binding resource is HBM bandwidth, not matmul shape.
    for i in range(bb):
        xb = x_ref[i]                                              # (C_in, T)
        hb = jnp.dot(w, xb, preferred_element_type=jnp.float32)    # (H, T) f32
        hb = jnp.maximum(hb + bias, 0.0)
        ob = jnp.dot(hb[:, :valid], pool,
                     preferred_element_type=jnp.float32)           # (H, T_out) f32
        o_ref[i] = ob.astype(o_ref.dtype)


# ---------------------------------------------------------------------------
# Tile picker: largest batch tile that keeps >= min(B, 8) grid steps and fits a
# conservative per-step VMEM budget (safe under the 16 MiB v5e scoped default).
# ---------------------------------------------------------------------------
def _pick_batch_tile(b, c_in, t, h_dim, t_out, itemsize,
                     vmem_budget_bytes=12 * 1024 * 1024, desired_steps=8):
    def pad(n, m):
        return -(-n // m) * m

    def step_bytes(bb):
        x_blk = 2 * bb * pad(c_in, 8) * pad(t, 128) * itemsize        # dbl-buffered in
        o_blk = 2 * bb * pad(h_dim, 8) * pad(t_out, 128) * itemsize   # dbl-buffered out
        w_blk = 2 * pad(h_dim, 8) * pad(c_in, 128) * itemsize
        b_blk = 2 * pad(h_dim, 8) * 128 * itemsize
        h_tmp = bb * pad(h_dim, 8) * pad(t, 128) * 4                  # f32 intermediate
        pmat = pad(t, 8) * pad(t_out, 128) * 4                        # in-kernel pool mat
        return x_blk + o_blk + w_blk + b_blk + h_tmp + pmat

    target_steps = min(b, desired_steps)
    best = 1
    for bb in range(1, b + 1):
        if b % bb:
            continue
        if b // bb < target_steps:
            break                      # bb increasing -> steps only shrink further
        if step_bytes(bb) <= vmem_budget_bytes:
            best = bb
    return best


# ---------------------------------------------------------------------------
# Public entry point.
# ---------------------------------------------------------------------------
@functools.partial(jax.jit, static_argnames=("kernel_size", "stride"))
def frame_avg_pool(x, weight, bias, *, kernel_size, stride):
    """FrameAvgPool forward: relu(conv1d_k1(x)) -> avg_pool1d.

    x: (B, C_in, T), weight: (H, C_in), bias: (H,). Returns (B, H, T_out).
    """
    b, c_in, t = x.shape
    h_dim = weight.shape[0]
    t_out = (t - kernel_size) // stride + 1
    valid = (t_out - 1) * stride + kernel_size

    # Fold the 1/k average into the projection: relu(z)/k == relu(z/k) for k > 0.
    inv_k = 1.0 / float(kernel_size)
    w_scaled = weight * inv_k                     # (H, C_in)
    b_scaled = bias.reshape(h_dim, 1) * inv_k     # (H, 1)

    bb = _pick_batch_tile(b, c_in, t, h_dim, t_out, x.dtype.itemsize)
    grid = (b // bb,)

    kernel = functools.partial(_frame_avg_pool_kernel,
                               bb=bb, t=t, t_out=t_out,
                               kernel_size=kernel_size, stride=stride)

    itemsize = x.dtype.itemsize
    cost = pl.CostEstimate(
        flops=2 * b * h_dim * c_in * t + 2 * b * h_dim * valid * t_out,
        transcendentals=0,
        bytes_accessed=(b * c_in * t * itemsize
                        + h_dim * c_in * itemsize + h_dim * itemsize
                        + b * h_dim * t_out * itemsize),
    )

    return pl.pallas_call(
        kernel,
        out_shape=jax.ShapeDtypeStruct((b, h_dim, t_out), x.dtype),
        grid_spec=pltpu.PrefetchScalarGridSpec(
            num_scalar_prefetch=0,
            grid=grid,
            in_specs=[
                pl.BlockSpec((bb, c_in, t), lambda i: (i, 0, 0)),   # native layout
                pl.BlockSpec((h_dim, c_in), lambda i: (0, 0)),
                pl.BlockSpec((h_dim, 1), lambda i: (0, 0)),
            ],
            out_specs=pl.BlockSpec((bb, h_dim, t_out), lambda i: (i, 0, 0)),
        ),
        compiler_params=pltpu.CompilerParams(dimension_semantics=("parallel",)),
        cost_estimate=cost,
    )(x, w_scaled, b_scaled)


def frame_avg_pool_ref(x, weight, bias, *, kernel_size, stride):
    """Plain-JAX reference matching the PyTorch module semantics."""
    h = jnp.einsum("hc,bct->bht", weight, x) + bias[None, :, None]
    h = jnp.maximum(h, 0.0)
    t = x.shape[-1]
    t_out = (t - kernel_size) // stride + 1
    outs = [h[:, :, i * stride: i * stride + kernel_size].mean(-1)
            for i in range(t_out)]
    return jnp.stack(outs, axis=-1)


if __name__ == "__main__":
    # Module config (small, consistent with the forward):
    input_size = 4     # C_in
    hidden_size = 32   # H
    kernel_size = 4
    stride = 4
    B, T = 2, 16       # batch, temporal length

    key = jax.random.PRNGKey(0)
    kx, kw, kb = jax.random.split(key, 3)

    x = jax.random.normal(kx, (B, input_size, T), dtype=jnp.float32)
    # Deterministic synthetic Conv1d(k=1) params: weight (H, C_in), bias (H,)
    weight = jax.random.normal(kw, (hidden_size, input_size), dtype=jnp.float32) * 0.1
    bias = jax.random.normal(kb, (hidden_size,), dtype=jnp.float32) * 0.1

    out = frame_avg_pool(x, weight, bias, kernel_size=kernel_size, stride=stride)
    out = jax.block_until_ready(out)

    ref = frame_avg_pool_ref(x, weight, bias, kernel_size=kernel_size, stride=stride)
    assert out.shape == ref.shape, (out.shape, ref.shape)
    assert jnp.allclose(out, ref, atol=1e-5, rtol=1e-5), "mismatch vs reference"

    # Also exercise an overlapping-window config through the same single path.
    out2 = frame_avg_pool(x, weight, bias, kernel_size=4, stride=2)
    ref2 = frame_avg_pool_ref(x, weight, bias, kernel_size=4, stride=2)
    assert jnp.allclose(jax.block_until_ready(out2), ref2, atol=1e-5, rtol=1e-5), \
        "mismatch vs reference (overlapping pooling)"

    print("KERNEL_OK")
</pallas_src>

<mosaic_0001>
module attributes {stable_mosaic.version = 11 : i64} {
  func.func @_frame_avg_pool_kernel(%arg0: i32, %arg1: memref<1x4x16xf32, #tpu.memory_space<vmem>>, %arg2: memref<32x4xf32, #tpu.memory_space<vmem>>, %arg3: memref<32x1xf32, #tpu.memory_space<vmem>>, %arg4: memref<1x32x4xf32, #tpu.memory_space<vmem>>) attributes {dimension_semantics = [#tpu.dimension_semantics<parallel>], iteration_bounds = array<i64: 2>, scalar_prefetch = 0 : i64, scratch_operands = 0 : i64, tpu.core_type = #tpu.core_type<tc>, window_params = [{transform_indices = @transform_0, window_bounds = array<i64: 1, 4, 16>}, {pipeline_mode = #tpu.pipeline_mode<synchronous>, transform_indices = @transform_1, window_bounds = array<i64: 32, 4>}, {pipeline_mode = #tpu.pipeline_mode<synchronous>, transform_indices = @transform_2, window_bounds = array<i64: 32, 1>}, {transform_indices = @transform_3, window_bounds = array<i64: 1, 32, 4>}]} {
    %c0 = arith.constant 0 : index
    %c0_0 = arith.constant 0 : index
    %0 = vector.load %arg2[%c0, %c0_0] : memref<32x4xf32, #tpu.memory_space<vmem>>, vector<32x4xf32>
    %c0_1 = arith.constant 0 : index
    %c0_2 = arith.constant 0 : index
    %1 = vector.load %arg3[%c0_1, %c0_2] : memref<32x1xf32, #tpu.memory_space<vmem>>, vector<32x1xf32>
    %2 = tpu.iota {dimensions = array<i32: 0>} : vector<16x4xi32>
    %3 = tpu.iota {dimensions = array<i32: 1>} : vector<16x4xi32>
    %c4_i32 = arith.constant 4 : i32
    %4 = vector.broadcast %c4_i32 : i32 to vector<16x4xi32>
    %5 = arith.muli %3, %4 : vector<16x4xi32>
    %6 = arith.cmpi sge, %2, %5 : vector<16x4xi32>
    %c4_i32_3 = arith.constant 4 : i32
    %7 = vector.broadcast %c4_i32_3 : i32 to vector<16x4xi32>
    %8 = arith.addi %5, %7 : vector<16x4xi32>
    %9 = arith.cmpi slt, %2, %8 : vector<16x4xi32>
    %10 = arith.andi %6, %9 : vector<16x4xi1>
    %11 = arith.extui %10 : vector<16x4xi1> to vector<16x4xi32>
    %12 = arith.sitofp %11 : vector<16x4xi32> to vector<16x4xf32>
    %c0_4 = arith.constant 0 : index
    %c0_5 = arith.constant 0 : index
    %c0_6 = arith.constant 0 : index
    %13 = vector.load %arg1[%c0_4, %c0_5, %c0_6] : memref<1x4x16xf32, #tpu.memory_space<vmem>>, vector<1x4x16xf32>
    %14 = vector.shape_cast %13 : vector<1x4x16xf32> to vector<4x16xf32>
    %cst = arith.constant dense<0.000000e+00> : vector<32x16xf32>
    %15 = tpu.matmul %0, %14, %cst {dimension_numbers = #tpu.dot_dimension_numbers<[1], [0], [0], [1], [0, 0, 1, 1], [], []>} : vector<32x4xf32>, vector<4x16xf32>, vector<32x16xf32> -> vector<32x16xf32>
    %16 = vector.broadcast %1 : vector<32x1xf32> to vector<32x16xf32>
    %17 = arith.addf %15, %16 : vector<32x16xf32>
    %cst_7 = arith.constant 0.000000e+00 : f32
    %18 = vector.broadcast %cst_7 : f32 to vector<32x16xf32>
    %19 = arith.maximumf %17, %18 : vector<32x16xf32>
    %cst_8 = arith.constant dense<0.000000e+00> : vector<32x4xf32>
    %20 = tpu.matmul %19, %12, %cst_8 {dimension_numbers = #tpu.dot_dimension_numbers<[1], [0], [0], [1], [0, 0, 1, 1], [], []>} : vector<32x16xf32>, vector<16x4xf32>, vector<32x4xf32> -> vector<32x4xf32>
    %c0_9 = arith.constant 0 : index
    %c0_10 = arith.constant 0 : index
    %c0_11 = arith.constant 0 : index
    %21 = vector.load %arg4[%c0_9, %c0_10, %c0_11] : memref<1x32x4xf32, #tpu.memory_space<vmem>>, vector<1x32x4xf32>
    %22 = vector.shape_cast %21 : vector<1x32x4xf32> to vector<32x4xf32>
    %23 = vector.shape_cast %20 : vector<32x4xf32> to vector<1x32x4xf32>
    tpu.vector_store %arg4[%c0_9, %c0_10, %c0_11], %23 {strides = array<i32>} : memref<1x32x4xf32, #tpu.memory_space<vmem>>, vector<1x32x4xf32>,
    return
  }
  func.func @transform_0(%arg0: i32) -> (i32, i32, i32) {
    %c0_i32 = arith.constant 0 : i32
    %c0_i32_0 = arith.constant 0 : i32
    %c0_i32_1 = arith.constant 0 : i32
    return %arg0, %c0_i32, %c0_i32_0 : i32, i32, i32
  }
  func.func @transform_1(%arg0: i32) -> (i32, i32) {
    %c0_i32 = arith.constant 0 : i32
    %c0_i32_0 = arith.constant 0 : i32
    %c0_i32_1 = arith.constant 0 : i32
    return %c0_i32, %c0_i32_0 : i32, i32
  }
  func.func @transform_2(%arg0: i32) -> (i32, i32) {
    %c0_i32 = arith.constant 0 : i32
    %c0_i32_0 = arith.constant 0 : i32
    %c0_i32_1 = arith.constant 0 : i32
    return %c0_i32, %c0_i32_0 : i32, i32
  }
  func.func @transform_3(%arg0: i32) -> (i32, i32, i32) {
    %c0_i32 = arith.constant 0 : i32
    %c0_i32_0 = arith.constant 0 : i32
    %c0_i32_1 = arith.constant 0 : i32
    return %arg0, %c0_i32, %c0_i32_0 : i32, i32, i32
  }
}

</mosaic_0001>

<bundles_post_ra>
// kernel: frame_avg_pool.1
= control target key start
LH: loop header
LB: loop body
LE: loop exit
PB: predicated region body
PF: predicated region fallthrough
CT: control target
= control target key end

     0   :  { %s576_s12 = smov 0   ;;  %s629_s0 = inlined_call_operand.vmem [shape: f32[2,4,16], index: 0, kind: input, shape index: {}]   ;;  %s630_s1 = inlined_call_operand.vmem [shape: f32[32,4], index: 1, kind: input, shape index: {}]   ;;  %s631_s2 = inlined_call_operand.vmem [shape: f32[32,1], index: 2, kind: input, shape index: {}]   ;;  %s632_s3 = inlined_call_operand.vmem [shape: f32[2,32,4], index: 3, kind: output, shape index: {}]  }
   0x1 LB: > { %s477_s13 = sadd.s32 4294967295, %s552_s12   ;;  %p481_p0 = scmp.ge.s32.totalorder %s552_s12, 1  ;;  %s552_s12 = sphi %s576_s12, %s13_s12  }
   0x2   : > { %p136_p1 = scmp.lt.s32.totalorder %s552_s12, 3 }
   0x4   : > { %p137_p2 = pnand %p481_p0, %p136_p1 }
   0x5   : > { %p159_p3 = scmp.lt.s32.totalorder (!%p137_p2), %s477_s13, 1  ;;  %v168_v0 = vld [vmem:[%s630_s1] sm:$0xff] (!%p137_p2)  ;;  %vm214_vm0 = vcmask (!%p137_p2), 31744   ;;  %v174_v2 = vld [vmem:[%s631_s2 + $0x10] sm:$0xff] (!%p137_p2)  ;;  %v554_v3 = vmov (!%p137_p2), 0   ;;  %vm227_vm1 = vcmask (!%p137_p2), 1043456   ;;  %v176_v10 = vlaneseq (!%p137_p2) }
   0x6   : > { %140 = sbr.rel (%p137_p2) target bundleno = 455 (0x1c7), region = 32  ;;  %514 = vmatprep.mubr.msk.f32.mxu0 (!%p137_p2), %vm214_vm0, %v168_v0  ;;  %v172_v1 = vld [vmem:[%s631_s2] sm:$0xff] (!%p137_p2)  ;;  %544 = vset.pattern.permute.xlu0 (!%p137_p2), %v554_v3  ;;  %v173_v4 = vld [vmem:[%s631_s2 + $0x8] sm:$0xff] (!%p137_p2)  ;;  %v175_v5 = vld [vmem:[%s631_s2 + $0x18] sm:$0xff] (!%p137_p2)  ;;  %v555_v16 = vmov (!%p137_p2), 1.0|1.0  }
   0x7   : > { %545 = vset.pattern.permute.xlu1 (!%p137_p2), %v554_v3  ;;  %196 = vperm.xlu0 (!%p137_p2), %544, %v172_v1   ;;  %v169_v7 = vld [vmem:[%s630_s1 + $0x8] sm:$0xff] (!%p137_p2)  ;;  %v170_v8 = vld [vmem:[%s630_s1 + $0x10] sm:$0xff] (!%p137_p2)  ;;  %v171_v9 = vld [vmem:[%s630_s1 + $0x18] sm:$0xff] (!%p137_p2)  ;;  %v180_v11 = vand.u32 (!%p137_p2), 127, %v176_v10  ;;  %v177_v12 = vshrl.u32 (!%p137_p2), %v176_v10, 7  ;;  %vm320_vm9 = vcmask (!%p137_p2), 130048  }
   0x8   : > { %206 = vperm.xlu1 (!%p137_p2), %545, %v174_v2  }
   0x9   : > { %v181_v13 = vmul.u32 (!%p137_p2), 4, %v180_v11  ;;  %v178_v14 = vadd.s32 (!%p137_p2), 8, %v177_v12 }
   0xb   : > { %201 = vperm.xlu0 (!%p137_p2), %544, %v173_v4   ;;  %v184_v15 = vadd.s32 (!%p137_p2), 4, %v181_v13  ;;  %vm182_vm2 = vcmp.ge.s32.totalorder (!%p137_p2), %v177_v12, %v181_v13  ;;  %vm183_vm3 = vcmp.ge.s32.totalorder (!%p137_p2), %v178_v14, %v181_v13 }
   0xc   : > { %211 = vperm.xlu1 (!%p137_p2), %545, %v175_v5  }
   0xd   : > { %s634_s13 = smov (!%p159_p3, %s477_s13), 1  ;;  %vm185_vm4 = vcmp.lt.s32.totalorder %v177_v12, %v184_v15  ;;  %vm186_vm5 = vcmp.lt.s32.totalorder %v178_v14, %v184_v15 }
   0xe   : > { %s482_s20 = sshll.u32 %s634_s13, 2  ;;  %vm187_vm6 = vmand %vm182_vm2, %vm185_vm4  ;;  %s500_s7 = sshll.u32 %s634_s13, 5 }
   0xf   : > { %s162_s25 = scalar_lea.vmem %s629_s0, %s482_s20  ;;  %vm188_vm7 = vmand %vm183_vm3, %vm186_vm5  ;;  %s167_s10 = scalar_lea.vmem %s632_s3, %s500_s7 }
  0x10   : > { %v193_v6 = vld [vmem:[%s162_s25] sm:$0xf]  ;;  %vm530_vm8 = vmpackc.low %vm188_vm7, %vm187_vm6 }
  0x11   : > { %512 = vmatprep.subr.msk.mxu0 %vm227_vm1, %v193_v6  ;;  %531 = vmatprep.subr.msk.bf16.mxu1 %vm530_vm8, %v555_v16 }
  0x12   : > { %513 = vmatpush3.msk.msra.mxu0 %vm227_vm1, %v193_v6  ;;  %533 = vmatpush3.bf16.msk.msra.mxu1 %vm530_vm8, %v555_v16 }
  0x13   : > { %515 = vmatmul.mubr.msk.f32.vlgmr.msra.gmra.mrb[0].mxu0 %vm214_vm0, %v169_v7 }
  0x14   : > { %517 = vmatprep.mubr.msk.f32.mxu0 %vm214_vm0, %v170_v8 }
  0x17   : > { %518 = vmatmul.mubr.msk.f32.gmra.mrb[2].mxu0 %vm214_vm0, %v171_v9 }
  0x86   : > { %v197_v17 = vpop.permute.xlu0 %196 }
  0x87   : > { %v207_v18 = vpop.permute.xlu1 %206 }
  0x8a   : > { %v202_v19 = vpop.permute.xlu0 %201 }
  0x8b   : > { %v212_v25 = vpop.permute.xlu1 %211 }
  0xe6   : > { %v516_v20 = vpop.f32.mrb[0].mxu0 }
  0xe7   : > { %v303_v21 = vadd.f32 %v516_v20, %v202_v19  ;;  %v297_v22 = vpop.f32.mrb[1].mxu0 }
  0xe8   : > { %v298_v23 = vadd.f32 %v297_v22, %v197_v17 }
  0xe9   : > { %v317_v27 = vmax.f32 %v303_v21, 0.0 }
  0xea   : > { %v316_v24 = vmax.f32 %v298_v23, 0.0  ;;  %v519_v26 = vpop.f32.mrb[2].mxu0 }
  0xeb   : > { %v313_v28 = vadd.f32 %v519_v26, %v212_v25  ;;  %v307_v29 = vpop.f32.mrb[3].mxu0 }
  0xec   : > { %v308_v30 = vadd.f32 %v307_v29, %v207_v18  ;;  %524 = vmatprep.mubr.msk.f32.mxu1 %vm320_vm9, %v316_v24 }
  0xed   : > { %525 = vmatmul.mubr.msk.f32.vlgmr.msra.gmra.mrb[0].mxu1 %vm320_vm9, %v317_v27  ;;  %v319_v32 = vmax.f32 %v313_v28, 0.0 }
  0xee   : > { %v318_v31 = vmax.f32 %v308_v30, 0.0 }
  0xf0   : > { %527 = vmatprep.mubr.msk.f32.mxu1 %vm320_vm9, %v318_v31 }
  0xf1   : > { %528 = vmatmul.mubr.msk.f32.gmra.mrb[2].mxu1 %vm320_vm9, %v319_v32 }
 0x1c0   : > { %v526_v33 = vpop.f32.mrb[0].mxu1 }
 0x1c1   : > { %419 = vst.msk [vmem:[%s167_s10 + $0x8] sm:$0xff] %vm214_vm0, %v526_v33  ;;  %v399_v34 = vpop.f32.mrb[1].mxu1 }
 0x1c2   : > { %418 = vst.msk [vmem:[%s167_s10] sm:$0xff] %vm214_vm0, %v399_v34 }
 0x1c4   : > { %v529_v35 = vpop.f32.mrb[2].mxu1 }
 0x1c5   : > { %421 = vst.msk [vmem:[%s167_s10 + $0x18] sm:$0xff] %vm214_vm0, %v529_v35  ;;  %v409_v36 = vpop.f32.mrb[3].mxu1 }
 0x1c6   : > { %420 = vst.msk [vmem:[%s167_s10 + $0x10] sm:$0xff] %vm214_vm0, %v409_v36 }
 0x1c7 PF: > { %s13_s12 = sadd.s32 1, %s552_s12  }
 0x1c8   : > { %p10_p4 = scmp.ge.s32.totalorder %s13_s12, 4  }
 0x1ca   :  { %12 = sbr.rel (!%p10_p4) target bundleno = 1 (0x1), region = 62 }

</bundles_post_ra>
